<compile_context>
chip_gen: v7x
topology: tpu7x:2x2x1
jax: 0.10.0
libtpu: 0.0.40
codegen_flags: <defaults>
</compile_context>

<pallas_src>
import math

import jax
import jax.numpy as jnp
from jax.experimental import pallas as pl
from jax.experimental.pallas import tpu as pltpu


_LANE = 128                   # TPU lane width
_SUBLANE = 8                  # f32 sublane granularity (scaled up for packed dtypes)
_MIN_BLOCK_BYTES = 512 << 10  # never shrink blocks below this when splitting for parallelism


def _block_target_bytes():
    """Generation-aware per-buffer block-size target (bytes)."""
    try:
        kind = jax.devices()[0].device_kind.lower()
    except Exception:
        kind = ""
    if "v7" in kind:
        return 6 << 20   # 3.2 TB/s HBM: bigger blocks amortize ~0.35us/step overhead
    if "v6" in kind:
        return 4 << 20   # 2 x (4+4) MiB double-buffered, inside the 32 MiB scoped default
    return 2 << 20       # v5e (16 MiB scoped default) and unknown chips


def _plan_tiles(R, C, itemsize, target_bytes):
    """Pick a (tr, tc) block for an (R, C) array of `itemsize`-byte elements."""
    total = R * C * itemsize
    # Large inputs: keep >= ~8 blocks so both v7x TensorCores get work and
    # DMA/compute overlap exists; never split below _MIN_BLOCK_BYTES, and do
    # not bother splitting tiny inputs at all.
    if total > 8 * _MIN_BLOCK_BYTES:
        target_bytes = min(target_bytes, max(total // 8, _MIN_BLOCK_BYTES))

    sub = _SUBLANE * max(1, 4 // itemsize)   # 8 for f32, 16 for bf16, ...
    row_bytes = C * itemsize

    if row_bytes * min(R, sub) <= target_bytes:
        # Full lane width per block; tile along rows (multiple of `sub`, or full R).
        tc = C
        if R <= sub:
            tr = R
        else:
            tr = max(sub, (target_bytes // row_bytes) // sub * sub)
            if tr >= R:
                tr = R
    else:
        # Few and/or very wide rows: take min(R, sub) rows, tile the lane axis.
        tr = R if R <= sub else sub
        tc = max(_LANE, (target_bytes // (tr * itemsize)) // _LANE * _LANE)
        if tc >= C:
            tc = C
    return tr, tc


def _swish_kernel(x_ref, hbeta_ref, o_ref):
    """out = x * sigmoid(beta*x), with half_beta = 0.5*beta folded on the host.

    sigmoid(b*x) = 0.5*(tanh(0.5*b*x)+1)  =>  out = (0.5*x) * (tanh(hb*x) + 1)
    One EUP tanh + 4 VALU ops per element; f32 compute regardless of x dtype.
    """
    x = x_ref[...].astype(jnp.float32)
    hb = hbeta_ref[...]                       # (1, tc) float32; broadcasts along rows
    t = jnp.tanh(hb * x)
    o_ref[...] = ((0.5 * x) * (t + 1.0)).astype(o_ref.dtype)


def _swish_tiled(x2d, half_beta_cols, target_bytes=None):
    """Elementwise swish over a 2-D view with per-column half-beta.

    x2d:            (R, C), any float dtype; C maps onto the lane axis.
    half_beta_cols: (C,) float32 == 0.5 * beta broadcast per column.
    No wrapper-side padding: unaligned C is handled by Mosaic masked lane-edge
    stores (block last dim == full C, or a ragged 128-multiple edge block).
    """
    R, C = x2d.shape
    if target_bytes is None:
        target_bytes = _block_target_bytes()
    tr, tc = _plan_tiles(R, C, x2d.dtype.itemsize, target_bytes)

    cp = dict(dimension_semantics=("parallel", "parallel"))
    if target_bytes > (4 << 20):
        # v7x: 2 x (in + out) double-buffered 6 MiB blocks ~ 24 MiB; leave headroom.
        cp["vmem_limit_bytes"] = 48 << 20

    return pl.pallas_call(
        _swish_kernel,
        out_shape=jax.ShapeDtypeStruct((R, C), x2d.dtype),
        grid=(pl.cdiv(R, tr), pl.cdiv(C, tc)),
        in_specs=[
            pl.BlockSpec((tr, tc), lambda i, j: (i, j)),
            pl.BlockSpec((1, tc), lambda i, j: (0, j)),  # 1 beta row vs tr data rows: negligible DMA
        ],
        out_specs=pl.BlockSpec((tr, tc), lambda i, j: (i, j)),
        compiler_params=pltpu.CompilerParams(**cp),
    )(x2d, half_beta_cols.reshape(1, C))


@jax.jit
def swish_forward(x, beta):
    """Replicates Swish.forward for 2D [B, D] or 4D NCHW [B, C, H, W] inputs."""
    beta_f32 = beta.astype(jnp.float32)   # keep beta in f32 all the way into the kernel

    if x.ndim == 2:
        B, D = x.shape
        half_beta = 0.5 * jnp.broadcast_to(beta_f32, (D,))
        # Small / unaligned D: fold k rows into one lane-aligned row via a free
        # contiguous reshape instead of padding the lane axis through HBM.
        k = _LANE // math.gcd(D, _LANE)
        if D % _LANE != 0 and k > 1 and B % k == 0:
            out = _swish_tiled(x.reshape(B // k, k * D), jnp.tile(half_beta, k))
            return out.reshape(B, D)
        return _swish_tiled(x, half_beta)

    elif x.ndim == 4:
        B, C, H, W = x.shape
        # Flatten NCHW -> (B, C*H*W): per-channel beta becomes a per-column
        # half-beta repeated H*W times, fed as a single 1-row block.
        half_beta = 0.5 * jnp.broadcast_to(beta_f32, (C,))
        half_beta_cols = jnp.repeat(half_beta, H * W)
        out = _swish_tiled(x.reshape(B, C * H * W), half_beta_cols)
        return out.reshape(B, C, H, W)

    else:
        raise ValueError(f"Swish expects 2D or 4D input, got {x.ndim}D")


def _ref_swish(x, beta):
    if x.ndim == 2:
        return x * jax.nn.sigmoid(beta[None, :] * x)
    return x * jax.nn.sigmoid(beta[None, :, None, None] * x)


if __name__ == "__main__":
    key = jax.random.PRNGKey(0)
    ks = jax.random.split(key, 12)
    tol = dict(atol=1e-5, rtol=1e-5)

    # --- 4D NCHW (Swish(dim=C)), H*W a multiple of 128 ---
    B, C, H, W = 2, 4, 16, 16
    x4 = jax.random.normal(ks[0], (B, C, H, W), dtype=jnp.float32)
    beta_c = 0.5 + jax.random.uniform(ks[1], (C,), dtype=jnp.float32)
    out4 = swish_forward(x4, beta_c)
    jax.block_until_ready(out4)
    assert out4.shape == x4.shape
    assert jnp.allclose(out4, _ref_swish(x4, beta_c), **tol), "4D mismatch"

    # --- 2D [B, D], D=32 < 128, B not divisible by k -> unpadded masked path ---
    x2 = jax.random.normal(ks[2], (2, 32), dtype=jnp.float32)
    beta_d = 0.5 + jax.random.uniform(ks[3], (32,), dtype=jnp.float32)
    out2 = swish_forward(x2, beta_d)
    jax.block_until_ready(out2)
    assert jnp.allclose(out2, _ref_swish(x2, beta_d), **tol), "2D mismatch"

    # --- 2D [8, 32]: exercises the free lane-folding reshape (k=4 -> (2, 128)) ---
    x2b = jax.random.normal(ks[4], (8, 32), dtype=jnp.float32)
    out2b = swish_forward(x2b, beta_d)
    jax.block_until_ready(out2b)
    assert jnp.allclose(out2b, _ref_swish(x2b, beta_d), **tol), "folded 2D mismatch"

    # --- 4D with non-128-aligned spatial size and scalar beta (dim <= 0) ---
    x4b = jax.random.normal(ks[5], (2, 3, 10, 10), dtype=jnp.float32)
    beta_s = jnp.ones((1,), dtype=jnp.float32)
    out4b = swish_forward(x4b, beta_s)
    jax.block_until_ready(out4b)
    assert out4b.shape == x4b.shape
    assert jnp.allclose(out4b, _ref_swish(x4b, beta_s), **tol), "unaligned 4D mismatch"

    # --- larger 2D: multi-block row grid + ragged lane edge (320 % 128 != 0) ---
    xb = jax.random.normal(ks[6], (4096, 320), dtype=jnp.float32)
    beta_b = 0.5 + jax.random.uniform(ks[7], (320,), dtype=jnp.float32)
    outb = swish_forward(xb, beta_b)
    jax.block_until_ready(outb)
    assert jnp.allclose(outb, _ref_swish(xb, beta_b), **tol), "tiled 2D mismatch"

    # --- bf16 input: f32 compute + f32 beta inside the kernel ---
    xbf = jax.random.normal(ks[8], (16, 256), dtype=jnp.bfloat16)
    beta_bf = 0.5 + jax.random.uniform(ks[9], (256,), dtype=jnp.float32)
    outbf = swish_forward(xbf, beta_bf)
    jax.block_until_ready(outbf)
    ref_bf = _ref_swish(xbf.astype(jnp.float32), beta_bf).astype(jnp.bfloat16)
    assert outbf.dtype == jnp.bfloat16
    assert jnp.allclose(outbf.astype(jnp.float32), ref_bf.astype(jnp.float32),
                        atol=2e-2, rtol=2e-2), "bf16 mismatch"

    # --- force the column-tiling regime (few, wide rows) with a tiny target ---
    xc = jax.random.normal(ks[10], (2, 8192), dtype=jnp.float32)
    beta_col = 0.5 + jax.random.uniform(ks[11], (8192,), dtype=jnp.float32)
    outc = _swish_tiled(xc, 0.5 * beta_col, target_bytes=32 << 10)
    jax.block_until_ready(outc)
    assert jnp.allclose(outc, xc * jax.nn.sigmoid(beta_col[None, :] * xc), **tol), \
        "column-tiled mismatch"

    print("KERNEL_OK")
</pallas_src>

<mosaic_0001>
module attributes {stable_mosaic.version = 11 : i64} {
  func.func @_swish_kernel(%arg0: i32, %arg1: i32, %arg2: memref<2x1024xf32, #tpu.memory_space<vmem>>, %arg3: memref<1x1024xf32, #tpu.memory_space<vmem>>, %arg4: memref<2x1024xf32, #tpu.memory_space<vmem>>) attributes {dimension_semantics = [#tpu.dimension_semantics<parallel>, #tpu.dimension_semantics<parallel>], iteration_bounds = array<i64: 1, 1>, scalar_prefetch = 0 : i64, scratch_operands = 0 : i64, tpu.core_type = #tpu.core_type<tc>, window_params = [{transform_indices = @transform_0, window_bounds = array<i64: 2, 1024>}, {transform_indices = @transform_1, window_bounds = array<i64: 1, 1024>}, {transform_indices = @transform_2, window_bounds = array<i64: 2, 1024>}]} {
    %c0 = arith.constant 0 : index
    %c0_0 = arith.constant 0 : index
    %0 = vector.load %arg2[%c0, %c0_0] : memref<2x1024xf32, #tpu.memory_space<vmem>>, vector<2x1024xf32>
    %c0_1 = arith.constant 0 : index
    %c0_2 = arith.constant 0 : index
    %1 = vector.load %arg3[%c0_1, %c0_2] : memref<1x1024xf32, #tpu.memory_space<vmem>>, vector<1x1024xf32>
    %2 = vector.broadcast %1 : vector<1x1024xf32> to vector<2x1024xf32>
    %3 = arith.mulf %2, %0 : vector<2x1024xf32>
    %4 = math.tanh %3 : vector<2x1024xf32>
    %cst = arith.constant 5.000000e-01 : f32
    %5 = vector.broadcast %cst : f32 to vector<2x1024xf32>
    %6 = arith.mulf %5, %0 : vector<2x1024xf32>
    %cst_3 = arith.constant 1.000000e+00 : f32
    %7 = vector.broadcast %cst_3 : f32 to vector<2x1024xf32>
    %8 = arith.addf %4, %7 : vector<2x1024xf32>
    %9 = arith.mulf %6, %8 : vector<2x1024xf32>
    %c0_4 = arith.constant 0 : index
    %c0_5 = arith.constant 0 : index
    %10 = vector.load %arg4[%c0_4, %c0_5] : memref<2x1024xf32, #tpu.memory_space<vmem>>, vector<2x1024xf32>
    tpu.vector_store %arg4[%c0_4, %c0_5], %9 {strides = array<i32>} : memref<2x1024xf32, #tpu.memory_space<vmem>>, vector<2x1024xf32>,
    return
  }
  func.func @transform_0(%arg0: i32, %arg1: i32) -> (i32, i32) {
    %c0_i32 = arith.constant 0 : i32
    return %arg0, %arg1 : i32, i32
  }
  func.func @transform_1(%arg0: i32, %arg1: i32) -> (i32, i32) {
    %c0_i32 = arith.constant 0 : i32
    %c0_i32_0 = arith.constant 0 : i32
    return %c0_i32, %arg1 : i32, i32
  }
  func.func @transform_2(%arg0: i32, %arg1: i32) -> (i32, i32) {
    %c0_i32 = arith.constant 0 : i32
    return %arg0, %arg1 : i32, i32
  }
}

</mosaic_0001>

<bundles_post_ra>
// kernel: swish_forward.1
= control target key start
LH: loop header
LB: loop body
LE: loop exit
PB: predicated region body
PF: predicated region fallthrough
CT: control target
= control target key end

     0   :  { %v15_v0 = vlaneseq  ;;  %v196_v2 = vmov 1983009808   ;;  %s249_s0 = inlined_call_operand.vmem [shape: f32[2,1024], index: 0, kind: input, shape index: {}]   ;;  %s250_s1 = inlined_call_operand.vmem [shape: f32[1,1024], index: 1, kind: input, shape index: {}]   ;;  %s251_s2 = inlined_call_operand.vmem [shape: f32[2,1024], index: 2, kind: output, shape index: {}]  }
   0x1   :  { %v215_v1 = vld [vmem:[%s249_s0] sm:$0xff]  ;;  %v59_v3 = vunpack.c.l.s4 %v196_v2  ;;  %v220_v4 = vld [vmem:[%s249_s0 + $0x8] sm:$0xff] }
   0x2   :  { %v16_v5 = vshrl.u32 %v15_v0, 7  ;;  %v13_v6 = vld [vmem:[%s250_s1] sm:$0xff]  ;;  %v57_v7 = vcombine.high %v215_v1, %v215_v1  ;;  %v74_v9 = vcombine.high %v220_v4, %v220_v4  ;;  %v115_v61 = vmul.f32 0.5, %v215_v1 }
   0x3   :  { %v60_v8 = vunpack.c.0.s8 %v59_v3 }
   0x4   :  { %v17_v10 = vsub.s32 0, %v16_v5  ;;  %v21_v11 = vsub.s32 1, %v16_v5  ;;  %v25_v12 = vsub.s32 2, %v16_v5  ;;  %v29_v13 = vsub.s32 3, %v16_v5 }
   0x5   :  { %v229_v14 = vsub.s32 %v60_v8, %v16_v5  ;;  %v33_v15 = vsub.s32 4, %v16_v5  ;;  %v37_v16 = vsub.s32 5, %v16_v5  ;;  %v41_v17 = vsub.s32 6, %v16_v5 }
   0x6   :  { %v18_v18 = vrot.slane %v13_v6, %v17_v10  ;;  %v22_v19 = vrot.slane %v13_v6, %v21_v11  ;;  %v26_v20 = vrot.slane %v13_v6, %v25_v12  ;;  %v30_v21 = vrot.slane %v13_v6, %v29_v13 }
   0x7   :  { %v64_v22 = vrot.slane %v215_v1, %v229_v14  ;;  %v71_v23 = vrot.slane %v57_v7, %v229_v14  ;;  %v34_v24 = vrot.slane %v13_v6, %v33_v15  ;;  %v38_v25 = vrot.slane %v13_v6, %v37_v16 }
   0x8   :  { %v42_v26 = vrot.slane %v13_v6, %v41_v17  ;;  %v45_v27 = vsub.s32 7, %v16_v5  ;;  %v81_v28 = vrot.slane %v220_v4, %v229_v14  ;;  %v88_v29 = vrot.slane %v74_v9, %v229_v14 }
   0x9   :  { %v72_v30 = vcombine.high %v64_v22, %v64_v22  ;;  %v73_v31 = vcombine.high %v71_v23, %v71_v23  ;;  %v99_v32 = vmul.f32 %v64_v22, %v18_v18  ;;  %v101_v33 = vmul.f32 %v71_v23, %v26_v20 }
   0xa   :  { %v46_v34 = vrot.slane %v13_v6, %v45_v27  ;;  %v89_v35 = vcombine.high %v81_v28, %v81_v28  ;;  %v90_v36 = vcombine.high %v88_v29, %v88_v29  ;;  %v103_v39 = vmul.f32 %v81_v28, %v34_v24 }
   0xb   :  { %v100_v37 = vmul.f32 %v72_v30, %v22_v19  ;;  %v102_v38 = vmul.f32 %v73_v31, %v30_v21  ;;  %180 = vtanh.f32 %v99_v32  ;;  %v105_v41 = vmul.f32 %v88_v29, %v42_v26 }
   0xc   :  { %182 = vtanh.f32 %v101_v33  ;;  %v104_v40 = vmul.f32 %v89_v35, %v38_v25  ;;  %v106_v42 = vmul.f32 %v90_v36, %v46_v34  ;;  %v116_v7 = vmul.f32 0.5, %v220_v4 }
   0xd   :  { %184 = vtanh.f32 %v100_v37 }
   0xe   :  { %186 = vtanh.f32 %v102_v38 }
   0xf   :  { %188 = vtanh.f32 %v103_v39 }
  0x10   :  { %190 = vtanh.f32 %v104_v40 }
  0x11   :  { %192 = vtanh.f32 %v105_v41 }
  0x12   :  { %194 = vtanh.f32 %v106_v42 }
  0x15   :  { %v181_v43 = vpop.eup %180 }
  0x16   :  { %v183_v44 = vpop.eup %182  ;;  %v117_v45 = vadd.f32 1.0, %v181_v43 }
  0x17   :  { %v185_v46 = vpop.eup %184  ;;  %v119_v47 = vadd.f32 1.0, %v183_v44 }
  0x18   :  { %v187_v48 = vpop.eup %186  ;;  %v118_v49 = vadd.f32 1.0, %v185_v46 }
  0x19   :  { %v189_v50 = vpop.eup %188  ;;  %v120_v51 = vadd.f32 1.0, %v187_v48 }
  0x1a   :  { %v191_v52 = vpop.eup %190  ;;  %v133_v53 = vcombine.low %v117_v45, %v118_v49  ;;  %v121_v54 = vadd.f32 1.0, %v189_v50 }
  0x1b   :  { %v193_v55 = vpop.eup %192  ;;  %v134_v56 = vcombine.low %v119_v47, %v120_v51  ;;  %v122_v57 = vadd.f32 1.0, %v191_v52 }
  0x1c   :  { %v195_v58 = vpop.eup %194  ;;  %v141_v59 = vrot.slane %v133_v53, %v229_v14  ;;  %v123_v60 = vadd.f32 1.0, %v193_v55 }
  0x1d   :  { %v148_v62 = vrot.slane %v134_v56, %v229_v14  ;;  %v124_v63 = vadd.f32 1.0, %v195_v58  ;;  %v150_v0 = vcombine.low %v121_v54, %v122_v57 }
  0x1f   :  { %v149_v2 = vcombine.low %v141_v59, %v148_v62  ;;  %v151_v3 = vcombine.low %v123_v60, %v124_v63  ;;  %v158_v5 = vrot.slane %v150_v0, %v229_v14 }
  0x21   :  { %v169_v6 = vmul.f32 %v149_v2, %v115_v61  ;;  %v165_v8 = vrot.slane %v151_v3, %v229_v14 }
  0x23   :  { %171 = vst [vmem:[%s251_s2] sm:$0xff] %v169_v6  ;;  %v166_v9 = vcombine.low %v158_v5, %v165_v8 }
  0x25   :  { %v170_v10 = vmul.f32 %v166_v9, %v116_v7 }
  0x27   :  { %172 = vst [vmem:[%s251_s2 + $0x8] sm:$0xff] %v170_v10 }

</bundles_post_ra>
